<compile_context>
chip_gen: v7x
topology: tpu7x:2x2x1
jax: 0.10.0
libtpu: 0.0.40
codegen_flags: <defaults>
</compile_context>

<pallas_src>
import math
from functools import partial

import jax
import jax.numpy as jnp
from jax.experimental import pallas as pl
from jax.experimental.pallas import tpu as pltpu


# ----------------------------------------------------------------------------
# Generation-aware VMEM budget and tile targets
# ----------------------------------------------------------------------------
def _default_vmem_limit():
    """~70% of physical VMEM: ~89 MiB on v5e/v6e (128 MiB), ~44 MiB on v7x."""
    try:
        info = pltpu.get_tpu_info()
        cap = int(getattr(info, "vmem_capacity_bytes", 0)) or (64 << 20)
    except Exception:
        cap = 64 << 20
    return max(32 << 20, min(int(cap * 0.70), 100 << 20))


VMEM_LIMIT = _default_vmem_limit()
TM_TARGET = 512      # row tile for token-major matmuls
TK_TARGET = 1024     # K split granularity when a full-K tile doesn't fit
TQ_TARGET = 256      # flash-attention query tile
TKV_TARGET = 512     # flash-attention key/value tile


def _round_up(x, m):
    return ((x + m - 1) // m) * m


def _row_tile_and_pad(M, target=TM_TARGET):
    """Row (sublane) tile: `target` for big M (pad M up), else M rounded to 8."""
    tm = target if M >= target else _round_up(M, 8)
    return tm, _round_up(M, tm)


def _divisor_tile(dim, target, quantum):
    """Largest multiple-of-`quantum` divisor of `dim` that is <= target, else dim."""
    t = min(target, dim)
    t -= t % quantum
    while t >= quantum:
        if dim % t == 0:
            return t
        t -= quantum
    return dim


def _pad_rows(a, rows):
    if a.shape[0] == rows:
        return a
    return jnp.pad(a, ((0, rows - a.shape[0]),) + ((0, 0),) * (a.ndim - 1))


# ----------------------------------------------------------------------------
# Pallas kernels
# ----------------------------------------------------------------------------
def _ln_kernel(x_ref, g_ref, b_ref, o_ref, *, eps):
    """LayerNorm over the last axis (statistics in f32)."""
    x = x_ref[...].astype(jnp.float32)
    mu = jnp.mean(x, axis=-1, keepdims=True)
    xc = x - mu
    var = jnp.mean(xc * xc, axis=-1, keepdims=True)
    y = xc * jax.lax.rsqrt(var + eps)
    o_ref[...] = (y * g_ref[...].astype(jnp.float32)
                  + b_ref[...].astype(jnp.float32)).astype(o_ref.dtype)


def _matmul_kernel(x_ref, w_ref, b_ref, o_ref, acc_ref, *, activation):
    """Tiled y = act(x @ w + b); bf16 operands, f32 accumulator."""
    k = pl.program_id(2)

    @pl.when(k == 0)
    def _():
        acc_ref[...] = jnp.zeros_like(acc_ref)

    acc_ref[...] += jnp.dot(x_ref[...], w_ref[...],
                            preferred_element_type=jnp.float32)

    @pl.when(k == pl.num_programs(2) - 1)
    def _():
        y = acc_ref[...] + b_ref[...].astype(jnp.float32)
        if activation == "gelu":
            # tanh-approx GELU (HF BERT default is exact erf GELU; close).
            y = jax.nn.gelu(y, approximate=True)
        elif activation == "tanh":
            y = jnp.tanh(y)
        o_ref[...] = y.astype(o_ref.dtype)


def _matmul_res_ln_kernel(x_ref, w_ref, b_ref, r_ref, g_ref, bt_ref,
                          o_ref, acc_ref, *, eps):
    """Tiled y = LayerNorm(x @ w + b + residual); LN epilogue fused (f32)."""
    k = pl.program_id(1)

    @pl.when(k == 0)
    def _():
        acc_ref[...] = jnp.zeros_like(acc_ref)

    acc_ref[...] += jnp.dot(x_ref[...], w_ref[...],
                            preferred_element_type=jnp.float32)

    @pl.when(k == pl.num_programs(1) - 1)
    def _():
        y = (acc_ref[...] + b_ref[...].astype(jnp.float32)
             + r_ref[...].astype(jnp.float32))
        mu = jnp.mean(y, axis=-1, keepdims=True)
        yc = y - mu
        var = jnp.mean(yc * yc, axis=-1, keepdims=True)
        yn = yc * jax.lax.rsqrt(var + eps)
        o_ref[...] = (yn * g_ref[...].astype(jnp.float32)
                      + bt_ref[...].astype(jnp.float32)).astype(o_ref.dtype)


def _qkv_hm_kernel(x_ref, w_ref, b_ref, q_ref, k_ref, v_ref):
    """Head-major fused QKV projection for one (batch, s-tile, head) step.

    x_ref: (1, ts, H), w_ref: (1, H, 3*Dh), b_ref: (1, 1, 3*Dh) f32,
    outputs q/k/v: (1, 1, ts, Dh) each.
    """
    y = jnp.dot(x_ref[0], w_ref[0], preferred_element_type=jnp.float32)
    y = y + b_ref[0].astype(jnp.float32)
    dh = q_ref.shape[-1]
    q_ref[0, 0] = y[:, :dh].astype(q_ref.dtype)
    k_ref[0, 0] = y[:, dh:2 * dh].astype(k_ref.dtype)
    v_ref[0, 0] = y[:, 2 * dh:].astype(v_ref.dtype)


def _flash_kernel(q_ref, k_ref, v_ref, bias_ref, o_ref,
                  m_sc, l_sc, acc_sc, *, scale):
    """Flash-style attention step for one (batch, head, q-tile, kv-tile).

    q_ref: (1,1,tq,Dh), k_ref/v_ref: (1,1,tkv,Dh), bias_ref: (1,1,tkv) f32
    additive key mask, o_ref: (1,1,tq,Dh).  Running max / sum / accumulator
    live in small VMEM scratch -> working set tq x tkv, never S x S.
    """
    kv = pl.program_id(3)

    @pl.when(kv == 0)
    def _():
        m_sc[...] = jnp.full(m_sc.shape, -jnp.inf, m_sc.dtype)
        l_sc[...] = jnp.zeros_like(l_sc)
        acc_sc[...] = jnp.zeros_like(acc_sc)

    q = q_ref[0, 0]
    k = k_ref[0, 0]
    v = v_ref[0, 0]
    # contract head_dim of q and k directly (no transpose in VMEM).
    s = jax.lax.dot_general(q, k, (((1,), (1,)), ((), ())),
                            preferred_element_type=jnp.float32)     # (tq, tkv)
    s = s * scale + bias_ref[0].astype(jnp.float32)                 # (1,tkv) bcast

    m_prev = m_sc[...]
    m_new = jnp.maximum(m_prev, jnp.max(s, axis=-1, keepdims=True))
    alpha = jnp.exp(m_prev - m_new)
    p = jnp.exp(s - m_new)
    l_sc[...] = alpha * l_sc[...] + jnp.sum(p, axis=-1, keepdims=True)
    acc_sc[...] = alpha * acc_sc[...] + jnp.dot(p.astype(v.dtype), v,
                                                preferred_element_type=jnp.float32)
    m_sc[...] = m_new

    @pl.when(kv == pl.num_programs(3) - 1)
    def _():
        o_ref[0, 0] = (acc_sc[...] *
                       pl.reciprocal(l_sc[...], approx=True)).astype(o_ref.dtype)


def _attnout_res_ln_kernel(ctx_ref, w_ref, b_ref, r_ref, g_ref, bt_ref,
                           o_ref, acc_ref, *, eps):
    """Attention output projection with the head axis as the reduction axis.

    ctx_ref: (1,1,ts,Dh) head-major context, w_ref: (1,Dh,H) head-major
    output-projection weight, accumulate over heads, then fuse bias +
    residual + LayerNorm into the epilogue and store one lane-dense
    (1, ts, H) block.  Avoids any HBM transpose back to token-major.
    """
    h = pl.program_id(2)

    @pl.when(h == 0)
    def _():
        acc_ref[...] = jnp.zeros_like(acc_ref)

    acc_ref[...] += jnp.dot(ctx_ref[0, 0], w_ref[0],
                            preferred_element_type=jnp.float32)

    @pl.when(h == pl.num_programs(2) - 1)
    def _():
        y = (acc_ref[...] + b_ref[...].astype(jnp.float32)
             + r_ref[0].astype(jnp.float32))
        mu = jnp.mean(y, axis=-1, keepdims=True)
        yc = y - mu
        var = jnp.mean(yc * yc, axis=-1, keepdims=True)
        yn = yc * jax.lax.rsqrt(var + eps)
        o_ref[0] = (yn * g_ref[...].astype(jnp.float32)
                    + bt_ref[...].astype(jnp.float32)).astype(o_ref.dtype)


# ----------------------------------------------------------------------------
# Pallas wrappers
# ----------------------------------------------------------------------------
def layernorm(x, gamma, beta, eps=1e-12, out_dtype=None):
    M, H = x.shape
    out_dtype = out_dtype or x.dtype
    tm, Mp = _row_tile_and_pad(M, 2 * TM_TARGET)
    xp = _pad_rows(x, Mp)
    out = pl.pallas_call(
        partial(_ln_kernel, eps=eps),
        grid=(Mp // tm,),
        in_specs=[
            pl.BlockSpec((tm, H), lambda i: (i, 0)),
            pl.BlockSpec((1, H), lambda i: (0, 0)),
            pl.BlockSpec((1, H), lambda i: (0, 0)),
        ],
        out_specs=pl.BlockSpec((tm, H), lambda i: (i, 0)),
        out_shape=jax.ShapeDtypeStruct((Mp, H), out_dtype),
        compiler_params=pltpu.CompilerParams(
            dimension_semantics=("parallel",),
            vmem_limit_bytes=VMEM_LIMIT),
        cost_estimate=pl.CostEstimate(
            flops=8 * Mp * H, transcendentals=Mp,
            bytes_accessed=Mp * H * (x.dtype.itemsize
                                     + jnp.dtype(out_dtype).itemsize) + 2 * H * 4),
    )(xp, gamma.reshape(1, H), beta.reshape(1, H))
    return out[:M] if Mp != M else out


def linear(x, w, b, activation="none", out_dtype=None):
    """Tiled y = act(x @ w + b). Full-N / full-K blocks when they fit VMEM."""
    M, K = x.shape
    N = w.shape[1]
    out_dtype = out_dtype or x.dtype
    ob = jnp.dtype(out_dtype).itemsize
    tm, Mp = _row_tile_and_pad(M, TM_TARGET)
    tn = N                    # full N: activation tile DMA'd once, reused for all cols
    tk = K                    # full K when the working set fits the budget

    def ws(tk_):
        return (2 * (tm * tk_ * x.dtype.itemsize + tk_ * tn * w.dtype.itemsize
                     + tm * tn * ob) + tm * tn * 4)

    if ws(tk) > int(0.8 * VMEM_LIMIT):
        tk = _divisor_tile(K, TK_TARGET, 128)

    xp = _pad_rows(x, Mp)
    trans = Mp * N if activation in ("gelu", "tanh") else 0
    out = pl.pallas_call(
        partial(_matmul_kernel, activation=activation),
        grid=(Mp // tm, N // tn, K // tk),
        in_specs=[
            pl.BlockSpec((tm, tk), lambda i, j, k: (i, k)),
            pl.BlockSpec((tk, tn), lambda i, j, k: (k, j)),
            pl.BlockSpec((1, tn), lambda i, j, k: (0, j)),
        ],
        out_specs=pl.BlockSpec((tm, tn), lambda i, j, k: (i, j)),
        out_shape=jax.ShapeDtypeStruct((Mp, N), out_dtype),
        scratch_shapes=[pltpu.VMEM((tm, tn), jnp.float32)],
        compiler_params=pltpu.CompilerParams(
            dimension_semantics=("parallel", "parallel", "arbitrary"),
            vmem_limit_bytes=VMEM_LIMIT),
        cost_estimate=pl.CostEstimate(
            flops=2 * Mp * N * K, transcendentals=trans,
            bytes_accessed=(Mp * K + K * N) * x.dtype.itemsize
            + Mp * N * ob + N * 4),
    )(xp, w, b.reshape(1, N))
    return out[:M] if Mp != M else out


def linear_residual_layernorm(x, w, b, residual, gamma, beta,
                              eps=1e-12, out_dtype=None):
    """Tiled y = LayerNorm(x @ w + b + residual); full N kept per tile."""
    M, K = x.shape
    N = w.shape[1]
    out_dtype = out_dtype or residual.dtype
    ob = jnp.dtype(out_dtype).itemsize
    tm, Mp = _row_tile_and_pad(M, TM_TARGET)
    tk = K

    def ws(tk_):
        return (2 * (tm * tk_ * x.dtype.itemsize + tk_ * N * w.dtype.itemsize
                     + tm * N * (residual.dtype.itemsize + ob)) + tm * N * 4)

    if ws(tk) > int(0.8 * VMEM_LIMIT):
        tk = _divisor_tile(K, TK_TARGET, 128)

    xp = _pad_rows(x, Mp)
    rp = _pad_rows(residual, Mp)
    out = pl.pallas_call(
        partial(_matmul_res_ln_kernel, eps=eps),
        grid=(Mp // tm, K // tk),
        in_specs=[
            pl.BlockSpec((tm, tk), lambda i, k: (i, k)),
            pl.BlockSpec((tk, N), lambda i, k: (k, 0)),
            pl.BlockSpec((1, N), lambda i, k: (0, 0)),
            pl.BlockSpec((tm, N), lambda i, k: (i, 0)),
            pl.BlockSpec((1, N), lambda i, k: (0, 0)),
            pl.BlockSpec((1, N), lambda i, k: (0, 0)),
        ],
        out_specs=pl.BlockSpec((tm, N), lambda i, k: (i, 0)),
        out_shape=jax.ShapeDtypeStruct((Mp, N), out_dtype),
        scratch_shapes=[pltpu.VMEM((tm, N), jnp.float32)],
        compiler_params=pltpu.CompilerParams(
            dimension_semantics=("parallel", "arbitrary"),
            vmem_limit_bytes=VMEM_LIMIT),
        cost_estimate=pl.CostEstimate(
            flops=2 * Mp * N * K + 10 * Mp * N, transcendentals=Mp,
            bytes_accessed=(Mp * K + K * N + Mp * N) * x.dtype.itemsize
            + Mp * N * ob + 3 * N * 4),
    )(xp, w, b.reshape(1, N), rp, gamma.reshape(1, N), beta.reshape(1, N))
    return out[:M] if Mp != M else out


def qkv_projection_head_major(x3, w_hm, b_hm):
    """x3: [B, S, H] -> head-major q, k, v each [B, nH, S, Dh] (no HBM transpose)."""
    B, S, H = x3.shape
    nH, _, dh3 = w_hm.shape
    Dh = dh3 // 3
    ts = _divisor_tile(S, TM_TARGET, 8)
    qkv_shape = jax.ShapeDtypeStruct((B, nH, S, Dh), x3.dtype)
    q, k, v = pl.pallas_call(
        _qkv_hm_kernel,
        grid=(B, S // ts, nH),
        in_specs=[
            pl.BlockSpec((1, ts, H), lambda b, si, h: (b, si, 0)),
            pl.BlockSpec((1, H, dh3), lambda b, si, h: (h, 0, 0)),
            pl.BlockSpec((1, 1, dh3), lambda b, si, h: (h, 0, 0)),
        ],
        out_specs=(
            pl.BlockSpec((1, 1, ts, Dh), lambda b, si, h: (b, h, si, 0)),
            pl.BlockSpec((1, 1, ts, Dh), lambda b, si, h: (b, h, si, 0)),
            pl.BlockSpec((1, 1, ts, Dh), lambda b, si, h: (b, h, si, 0)),
        ),
        out_shape=(qkv_shape, qkv_shape, qkv_shape),
        compiler_params=pltpu.CompilerParams(
            dimension_semantics=("parallel", "parallel", "parallel"),
            vmem_limit_bytes=VMEM_LIMIT),
        cost_estimate=pl.CostEstimate(
            flops=2 * B * S * H * 3 * H, transcendentals=0,
            bytes_accessed=(B * nH * S * H + B * H * 3 * H
                            + 3 * B * nH * S * Dh) * x3.dtype.itemsize),
    )(x3, w_hm, b_hm)
    return q, k, v


def flash_attention(q, k, v, key_bias, scale):
    """q/k/v: [B, nH, S, Dh], key_bias: [B, 1, S] additive mask -> [B, nH, S, Dh]."""
    B, nH, S, Dh = q.shape
    tq = _divisor_tile(S, TQ_TARGET, 8)
    tkv = _divisor_tile(S, TKV_TARGET, 128)    # multiple of 128, or full S
    return pl.pallas_call(
        partial(_flash_kernel, scale=scale),
        grid=(B, nH, S // tq, S // tkv),
        in_specs=[
            pl.BlockSpec((1, 1, tq, Dh), lambda b, h, qi, ki: (b, h, qi, 0)),
            pl.BlockSpec((1, 1, tkv, Dh), lambda b, h, qi, ki: (b, h, ki, 0)),
            pl.BlockSpec((1, 1, tkv, Dh), lambda b, h, qi, ki: (b, h, ki, 0)),
            pl.BlockSpec((1, 1, tkv), lambda b, h, qi, ki: (b, 0, ki)),
        ],
        out_specs=pl.BlockSpec((1, 1, tq, Dh), lambda b, h, qi, ki: (b, h, qi, 0)),
        out_shape=jax.ShapeDtypeStruct((B, nH, S, Dh), q.dtype),
        scratch_shapes=[
            pltpu.VMEM((tq, 1), jnp.float32),     # running max
            pltpu.VMEM((tq, 1), jnp.float32),     # running sum
            pltpu.VMEM((tq, Dh), jnp.float32),    # output accumulator
        ],
        compiler_params=pltpu.CompilerParams(
            dimension_semantics=("parallel", "parallel", "parallel", "arbitrary"),
            vmem_limit_bytes=VMEM_LIMIT),
        cost_estimate=pl.CostEstimate(
            flops=4 * B * nH * S * S * Dh,
            transcendentals=2 * B * nH * S * S,
            bytes_accessed=4 * B * nH * S * Dh * q.dtype.itemsize + B * S * 4),
    )(q, k, v, key_bias)


def attn_output_residual_layernorm(ctx, w_o_hm, b_o, residual3, gamma, beta,
                                   eps=1e-12, out_dtype=None):
    """ctx: [B, nH, S, Dh] head-major -> LayerNorm(ctx @ Wo + b + residual): [B, S, H]."""
    B, nH, S, Dh = ctx.shape
    H = w_o_hm.shape[-1]
    out_dtype = out_dtype or residual3.dtype
    ts = _divisor_tile(S, TM_TARGET, 8)
    return pl.pallas_call(
        partial(_attnout_res_ln_kernel, eps=eps),
        grid=(B, S // ts, nH),
        in_specs=[
            pl.BlockSpec((1, 1, ts, Dh), lambda b, si, h: (b, h, si, 0)),
            pl.BlockSpec((1, Dh, H), lambda b, si, h: (h, 0, 0)),
            pl.BlockSpec((1, H), lambda b, si, h: (0, 0)),
            pl.BlockSpec((1, ts, H), lambda b, si, h: (b, si, 0)),
            pl.BlockSpec((1, H), lambda b, si, h: (0, 0)),
            pl.BlockSpec((1, H), lambda b, si, h: (0, 0)),
        ],
        out_specs=pl.BlockSpec((1, ts, H), lambda b, si, h: (b, si, 0)),
        out_shape=jax.ShapeDtypeStruct((B, S, H), out_dtype),
        scratch_shapes=[pltpu.VMEM((ts, H), jnp.float32)],
        compiler_params=pltpu.CompilerParams(
            dimension_semantics=("parallel", "parallel", "arbitrary"),
            vmem_limit_bytes=VMEM_LIMIT),
        cost_estimate=pl.CostEstimate(
            flops=2 * B * S * H * H + 10 * B * S * H, transcendentals=B * S,
            bytes_accessed=(2 * B * S * H + B * H * H) * ctx.dtype.itemsize
            + B * S * H * jnp.dtype(out_dtype).itemsize + 3 * H * 4),
    )(ctx, w_o_hm, b_o.reshape(1, H), residual3,
      gamma.reshape(1, H), beta.reshape(1, H))


# ----------------------------------------------------------------------------
# Deterministic parameter initialization (synthetic mini-BERT)
# ----------------------------------------------------------------------------
def init_params(key, *, vocab=64, max_pos=16, type_vocab=2,
                hidden=64, num_heads=2, ffn=128, num_layers=2):
    Dh = hidden // num_heads
    keys = jax.random.split(key, 4 + 4 * num_layers)
    ki = iter(keys)

    def w(shape, dtype=jnp.bfloat16):
        return (jax.random.normal(next(ki), shape, jnp.float32) * 0.02).astype(dtype)

    def to_head_major_qkv(w_qkv):
        # Standard HF fused [H, 3H] (Q|K|V columns) -> [nH, H, 3*Dh]:
        # per-head contiguous q|k|v column group (one-time, init-only reorder).
        wq, wk, wv = jnp.split(w_qkv, 3, axis=1)

        def hm(m):
            return jnp.transpose(m.reshape(hidden, num_heads, Dh), (1, 0, 2))

        return jnp.concatenate([hm(wq), hm(wk), hm(wv)], axis=-1)

    params = {
        "hidden": hidden,
        "num_heads": num_heads,
        "word_emb": w((vocab, hidden), jnp.float32),
        "pos_emb": w((max_pos, hidden), jnp.float32),
        "type_emb": w((type_vocab, hidden), jnp.float32),
        "emb_ln_g": jnp.ones((hidden,), jnp.float32),
        "emb_ln_b": jnp.zeros((hidden,), jnp.float32),
        "pool_w": w((hidden, hidden), jnp.float32),
        "pool_b": jnp.zeros((hidden,), jnp.float32),
        "layers": [],
    }
    for _ in range(num_layers):
        w_qkv = w((hidden, 3 * hidden))                 # bf16 matmul weights
        w_o = w((hidden, hidden))
        params["layers"].append({
            "w_qkv_hm": to_head_major_qkv(w_qkv),        # [nH, H, 3*Dh]
            "b_qkv_hm": jnp.zeros((num_heads, 1, 3 * Dh), jnp.float32),
            "w_o_hm": w_o.reshape(num_heads, Dh, hidden),  # [nH, Dh, H]
            "b_o": jnp.zeros((hidden,), jnp.float32),
            "ln1_g": jnp.ones((hidden,), jnp.float32),
            "ln1_b": jnp.zeros((hidden,), jnp.float32),
            "w_ff1": w((hidden, ffn)),
            "b_ff1": jnp.zeros((ffn,), jnp.float32),
            "w_ff2": w((ffn, hidden)),
            "b_ff2": jnp.zeros((hidden,), jnp.float32),
            "ln2_g": jnp.ones((hidden,), jnp.float32),
            "ln2_b": jnp.zeros((hidden,), jnp.float32),
        })
    return params


# ----------------------------------------------------------------------------
# TransformersEncoder.forward equivalent
# ----------------------------------------------------------------------------
def transformers_encoder_forward(params, input_ids, attention_masks,
                                 token_type_ids, with_token_type_ids=True,
                                 use_last_hidden_states=2, lstm=False):
    B, S = input_ids.shape
    H = params["hidden"]
    nH = params["num_heads"]
    Dh = H // nH
    L = len(params["layers"])
    S_pad = _round_up(S, 8)

    # --- embeddings: gathers are glue in plain JAX, LN runs in a kernel ---
    emb = jnp.take(params["word_emb"], input_ids, axis=0)
    emb = emb + params["pos_emb"][:S][None, :, :]
    if with_token_type_ids:
        emb = emb + jnp.take(params["type_emb"], token_type_ids, axis=0)
    if S_pad != S:
        emb = jnp.pad(emb, ((0, 0), (0, S_pad - S), (0, 0)))
    x = layernorm(emb.reshape(B * S_pad, H), params["emb_ln_g"],
                  params["emb_ln_b"], out_dtype=jnp.bfloat16)   # bf16 stream
    x3 = x.reshape(B, S_pad, H)
    hidden_states = [x3]

    # additive key bias: 0 for visible keys, -1e9 for masked / padded keys
    mask = attention_masks.astype(jnp.float32)
    if S_pad != S:
        mask = jnp.pad(mask, ((0, 0), (0, S_pad - S)))
    key_bias = ((1.0 - mask) * -1e9).reshape(B, 1, S_pad)
    scale = 1.0 / math.sqrt(Dh)

    # --- transformer layers ---
    for li, layer in enumerate(params["layers"]):
        q, k, v = qkv_projection_head_major(x3, layer["w_qkv_hm"],
                                            layer["b_qkv_hm"])     # [B,nH,S,Dh]
        ctx = flash_attention(q, k, v, key_bias, scale)            # [B,nH,S,Dh]
        x3 = attn_output_residual_layernorm(ctx, layer["w_o_hm"], layer["b_o"],
                                            x3, layer["ln1_g"], layer["ln1_b"])
        xf = x3.reshape(B * S_pad, H)                              # free reshape
        ff = linear(xf, layer["w_ff1"], layer["b_ff1"], activation="gelu")
        last = (li == L - 1)
        xf = linear_residual_layernorm(
            ff, layer["w_ff2"], layer["b_ff2"], xf,
            layer["ln2_g"], layer["ln2_b"],
            out_dtype=jnp.float32 if last else jnp.bfloat16)       # f32 out on last
        x3 = xf.reshape(B, S_pad, H)
        hidden_states.append(x3)

    last_hidden_states = x3[:, :S].astype(jnp.float32)             # outputs[0]
    # pooler is (B, H)-sized glue: keep it in plain jnp (sub-vreg work).
    cls = last_hidden_states[:, 0, :]
    pooled = jnp.tanh(cls @ params["pool_w"] + params["pool_b"])   # outputs[1]

    if use_last_hidden_states > 0:
        cat = [pooled]
        for hs in hidden_states[-use_last_hidden_states:]:
            cat.append(hs[:, 0].astype(jnp.float32))               # CLS slices only
        cat = jnp.concatenate(cat, axis=1)
        outputs = (last_hidden_states, cat)
    else:
        # only build the f32 all-hidden-states tuple when it is returned.
        outputs = (last_hidden_states, pooled,
                   tuple(hs[:, :S].astype(jnp.float32) for hs in hidden_states))

    if lstm:
        # TODO(synk): bidirectional nn.LSTM head (sequential recurrence) has no
        # clean Pallas hot-path here; not implemented.
        raise NotImplementedError("lstm=True path not implemented")

    return outputs


# ----------------------------------------------------------------------------
if __name__ == "__main__":
    B, S = 2, 8
    HIDDEN, NUM_HEADS, FFN, LAYERS = 64, 2, 128, 2

    key = jax.random.PRNGKey(0)
    k_param, k_ids, k_type = jax.random.split(key, 3)

    params = init_params(k_param, hidden=HIDDEN, num_heads=NUM_HEADS,
                         ffn=FFN, num_layers=LAYERS)

    input_ids = jax.random.randint(k_ids, (B, S), 0, 64, dtype=jnp.int32)
    attention_masks = jnp.array(
        [[1, 1, 1, 1, 1, 1, 1, 1],
         [1, 1, 1, 1, 1, 1, 0, 0]], dtype=jnp.float32)
    token_type_ids = jax.random.randint(k_type, (B, S), 0, 2, dtype=jnp.int32)

    last_hidden, cat = transformers_encoder_forward(
        params, input_ids, attention_masks, token_type_ids,
        with_token_type_ids=True, use_last_hidden_states=2, lstm=False)

    jax.block_until_ready((last_hidden, cat))
    assert last_hidden.shape == (B, S, HIDDEN)
    assert cat.shape == (B, 3 * HIDDEN)   # pooled + CLS of last 2 hidden states
    assert bool(jnp.isfinite(last_hidden).all())
    assert bool(jnp.isfinite(cat).all())
    print("KERNEL_OK")
</pallas_src>

<mosaic_0001>
module attributes {stable_mosaic.version = 11 : i64} {
  func.func @_ln_kernel(%arg0: i32, %arg1: memref<16x64xf32, #tpu.memory_space<vmem>>, %arg2: memref<1x64xf32, #tpu.memory_space<vmem>>, %arg3: memref<1x64xf32, #tpu.memory_space<vmem>>, %arg4: memref<16x64xbf16, #tpu.memory_space<vmem>>) attributes {dimension_semantics = [#tpu.dimension_semantics<parallel>], iteration_bounds = array<i64: 1>, scalar_prefetch = 0 : i64, scratch_operands = 0 : i64, tpu.core_type = #tpu.core_type<tc>, window_params = [{transform_indices = @transform_0, window_bounds = array<i64: 16, 64>}, {pipeline_mode = #tpu.pipeline_mode<synchronous>, transform_indices = @transform_1, window_bounds = array<i64: 1, 64>}, {pipeline_mode = #tpu.pipeline_mode<synchronous>, transform_indices = @transform_2, window_bounds = array<i64: 1, 64>}, {transform_indices = @transform_3, window_bounds = array<i64: 16, 64>}]} {
    %c0 = arith.constant 0 : index
    %c0_0 = arith.constant 0 : index
    %0 = vector.load %arg1[%c0, %c0_0] : memref<16x64xf32, #tpu.memory_space<vmem>>, vector<16x64xf32>
    %cst = arith.constant dense<0.000000e+00> : vector<16xf32>
    %1 = vector.multi_reduction <add>, %0, %cst [1] : vector<16x64xf32> to vector<16xf32>
    %2 = vector.shape_cast %1 : vector<16xf32> to vector<16x1xf32>
    %cst_1 = arith.constant 6.400000e+01 : f32
    %3 = vector.broadcast %cst_1 : f32 to vector<16x1xf32>
    %4 = arith.divf %2, %3 : vector<16x1xf32>
    %5 = vector.broadcast %4 : vector<16x1xf32> to vector<16x64xf32>
    %6 = arith.subf %0, %5 : vector<16x64xf32>
    %7 = arith.mulf %6, %6 : vector<16x64xf32>
    %cst_2 = arith.constant dense<0.000000e+00> : vector<16xf32>
    %8 = vector.multi_reduction <add>, %7, %cst_2 [1] : vector<16x64xf32> to vector<16xf32>
    %9 = vector.shape_cast %8 : vector<16xf32> to vector<16x1xf32>
    %cst_3 = arith.constant 6.400000e+01 : f32
    %10 = vector.broadcast %cst_3 : f32 to vector<16x1xf32>
    %11 = arith.divf %9, %10 : vector<16x1xf32>
    %cst_4 = arith.constant 9.99999996E-13 : f32
    %12 = vector.broadcast %cst_4 : f32 to vector<16x1xf32>
    %13 = arith.addf %11, %12 : vector<16x1xf32>
    %14 = math.rsqrt %13 : vector<16x1xf32>
    %15 = vector.broadcast %14 : vector<16x1xf32> to vector<16x64xf32>
    %16 = arith.mulf %6, %15 : vector<16x64xf32>
    %c0_5 = arith.constant 0 : index
    %c0_6 = arith.constant 0 : index
    %17 = vector.load %arg2[%c0_5, %c0_6] : memref<1x64xf32, #tpu.memory_space<vmem>>, vector<1x64xf32>
    %18 = vector.broadcast %17 : vector<1x64xf32> to vector<16x64xf32>
    %19 = arith.mulf %16, %18 : vector<16x64xf32>
    %c0_7 = arith.constant 0 : index
    %c0_8 = arith.constant 0 : index
    %20 = vector.load %arg3[%c0_7, %c0_8] : memref<1x64xf32, #tpu.memory_space<vmem>>, vector<1x64xf32>
    %21 = vector.broadcast %20 : vector<1x64xf32> to vector<16x64xf32>
    %22 = arith.addf %19, %21 : vector<16x64xf32>
    %23 = arith.truncf %22 : vector<16x64xf32> to vector<16x64xbf16>
    %c0_9 = arith.constant 0 : index
    %c0_10 = arith.constant 0 : index
    %24 = vector.load %arg4[%c0_9, %c0_10] : memref<16x64xbf16, #tpu.memory_space<vmem>>, vector<16x64xbf16>
    tpu.vector_store %arg4[%c0_9, %c0_10], %23 {strides = array<i32>} : memref<16x64xbf16, #tpu.memory_space<vmem>>, vector<16x64xbf16>,
    return
  }
  func.func @transform_0(%arg0: i32) -> (i32, i32) {
    %c0_i32 = arith.constant 0 : i32
    %c0_i32_0 = arith.constant 0 : i32
    return %arg0, %c0_i32 : i32, i32
  }
  func.func @transform_1(%arg0: i32) -> (i32, i32) {
    %c0_i32 = arith.constant 0 : i32
    %c0_i32_0 = arith.constant 0 : i32
    %c0_i32_1 = arith.constant 0 : i32
    return %c0_i32, %c0_i32_0 : i32, i32
  }
  func.func @transform_2(%arg0: i32) -> (i32, i32) {
    %c0_i32 = arith.constant 0 : i32
    %c0_i32_0 = arith.constant 0 : i32
    %c0_i32_1 = arith.constant 0 : i32
    return %c0_i32, %c0_i32_0 : i32, i32
  }
  func.func @transform_3(%arg0: i32) -> (i32, i32) {
    %c0_i32 = arith.constant 0 : i32
    %c0_i32_0 = arith.constant 0 : i32
    return %arg0, %c0_i32 : i32, i32
  }
}

</mosaic_0001>

<bundles_post_ra>
// kernel: tpu_custom_call.1
= control target key start
LH: loop header
LB: loop body
LE: loop exit
PB: predicated region body
PF: predicated region fallthrough
CT: control target
= control target key end

     0   :  { %8 = vsyncpa [#allocation3], 0  ;;  %s229_s0 = inlined_call_operand.hbm [shape: f32[16,64], index: 0, kind: input, shape index: {}]   ;;  %s230_s1 = inlined_call_operand.vmem [shape: f32[1,64], index: 1, kind: input, shape index: {}]   ;;  %s231_s2 = inlined_call_operand.vmem [shape: f32[1,64], index: 2, kind: input, shape index: {}]   ;;  %s232_s3 = inlined_call_operand.hbm [shape: bf16[16,64], index: 3, kind: output, shape index: {}]  }
   0x1   :  { %9 = vsyncpa [#allocation4], 0  ;;  %s169_s12 = smov [#allocation2]   ;;  %s121_s16 = scalar_lea.hbm %s229_s0, 256 }
   0x2   :  { %s15_s13 = sshll.u32 %s169_s12, 4  ;;  %p122_p0 = scmp.ne.s32.totalorder %s229_s0, %s121_s16  ;;  %s16_s13 = int_to_ptr.vmem [resolvable:$true] %s15_s13 }
   0x3   :  { %p125_p1 = scmp.lt.u32.totalorder %s121_s16, %s229_s0 }
   0x5   :  { %p127_p2 = pnand %p125_p1, %p122_p0 }
   0x7   :  { %130 = shalt.err (!%p127_p2)
}
   0x8   :  { %s131_s21 = scalar_lea.vmem %s16_s13, 256  ;;  %p136_p4 = scmp.lt.s32.totalorder %s16_s13, %s16_s13 }
   0x9   :  { %p132_p3 = scmp.ne.s32.totalorder %s16_s13, %s131_s21  ;;  %p137_p5 = scmp.lt.s32.totalorder %s131_s21, %s131_s21 }
   0xb   :  { %p138_p6 = por %p137_p5, %p136_p4 }
   0xd   :  { %p139_p7 = pnand %p138_p6, %p132_p3 }
   0xf   :  { %142 = shalt.err (!%p139_p7)
}
  0x10   :  { %s170_s22 = smov 128   ;;  %s171_s23 = smov 8  }
  0x11   :  { %21 = dma.hbm_to_vmem [thread:$0]  %s229_s0, 256, %s16_s13, [#allocation3], %s170_s22, %s170_s22, %s171_s23  }
  0x12   :  { %165 = dma.done.wait [#allocation3], 256  }
  0x13   :  { %166 = vsyncadd [#allocation3], 4294967040  ;;  %vm31_vm0 = vcmask 523264   ;;  %v29_v0 = vld [vmem:[#allocation2] sm:$0xff]  ;;  %v30_v1 = vld [vmem:[#allocation2 + $0x8] sm:$0xff]  ;;  %vm85_vm1 = vcmask 519168  }
  0x14   :  { %v32_v2 = vsel %vm31_vm0, %v29_v0, 0.0  ;;  %v35_v3 = vsel %vm31_vm0, %v30_v1, 0.0  ;;  %v105_v21 = vld [vmem:[%s230_s1] ss:$0 sm:$0xff]  ;;  %s172_s29 = smov [#allocation5]  }
  0x15   :  { %33 = vadd.xlane.f32.xlu0 %v32_v2  ;;  %v106_v23 = vld [vmem:[%s231_s2] ss:$0 sm:$0xff]  ;;  %s93_s30 = sshll.u32 %s172_s29, 4  ;;  %s94_s30 = int_to_ptr.vmem [resolvable:$true] %s93_s30 }
  0x16   :  { %s143_s1 = scalar_lea.vmem %s94_s30, 128  ;;  %p148_p9 = scmp.lt.s32.totalorder %s94_s30, %s94_s30 }
  0x17   :  { %p144_p8 = scmp.ne.s32.totalorder %s94_s30, %s143_s1  ;;  %p149_p10 = scmp.lt.s32.totalorder %s143_s1, %s143_s1 }
  0x19   :  { %36 = vadd.xlane.f32.xlu0 %v35_v3  ;;  %p150_p11 = por %p149_p10, %p148_p9 }
  0x1b   :  { %p151_p12 = pnand %p150_p11, %p144_p8 }
  0xa2   :  { %v34_v4 = vpop.xlane.xlu0 %33 }
  0xa3   :  { %v39_v5 = vmul.f32 0.015625, %v34_v4 }
  0xa5   :  { %v41_v6 = vsub.f32 %v29_v0, %v39_v5 }
  0xa6   :  { %v37_v7 = vpop.xlane.xlu0 %36 }
  0xa7   :  { %v40_v8 = vmul.f32 0.015625, %v37_v7  ;;  %v43_v9 = vmul.f32 %v41_v6, %v41_v6 }
  0xa9   :  { %v42_v10 = vsub.f32 %v30_v1, %v40_v8  ;;  %v45_v11 = vsel %vm31_vm0, %v43_v9, 0.0 }
  0xaa   :  { %46 = vadd.xlane.f32.xlu1 %v45_v11 }
  0xab   :  { %v44_v12 = vmul.f32 %v42_v10, %v42_v10 }
  0xad   :  { %v48_v13 = vsel %vm31_vm0, %v44_v12, 0.0 }
  0xae   :  { %49 = vadd.xlane.f32.xlu1 %v48_v13 }
 0x137   :  { %v47_v14 = vpop.xlane.xlu1 %46 }
 0x138   :  { %v51_v15 = vmul.f32 0.015625, %v47_v14 }
 0x13a   :  { %v53_v16 = vadd.f32 1e-12, %v51_v15 }
 0x13b   :  { %v50_v17 = vpop.xlane.xlu1 %49 }
 0x13c   :  { %117 = vrsqrt.f32 %v53_v16  ;;  %v52_v18 = vmul.f32 0.015625, %v50_v17 }
 0x13e   :  { %v54_v19 = vadd.f32 1e-12, %v52_v18 }
 0x140   :  { %119 = vrsqrt.f32 %v54_v19 }
 0x146   :  { %v118_v20 = vpop.eup %117 }
 0x147   :  { %v57_v22 = vmul.f32 %v118_v20, %v41_v6 }
 0x149   :  { %v66_v24 = vmul.f32 %v105_v21, %v57_v22 }
 0x14a   :  { %v120_v25 = vpop.eup %119 }
 0x14b   :  { %v58_v26 = vmul.f32 %v120_v25, %v42_v10  ;;  %v75_v27 = vadd.f32 %v106_v23, %v66_v24 }
 0x14d   :  { %v67_v28 = vmul.f32 %v105_v21, %v58_v26  ;;  %v109_v29 = vpack.c.bf16 %v75_v27, %v75_v27 }
 0x14f   :  { %v76_v30 = vadd.f32 %v106_v23, %v67_v28  ;;  %86 = vst.msk [vmem:[#allocation5] sm:$0xf] %vm85_vm1, %v109_v29 }
 0x151   :  { %v110_v31 = vpack.c.bf16 %v76_v30, %v76_v30 }
 0x153   :  { %87 = vst.msk [vmem:[#allocation5 + $0x4] sm:$0xf] %vm85_vm1, %v110_v31 }
 0x154   :  { %154 = shalt.err (!%p151_p12)
}
 0x155   :  { %s155_s5 = scalar_lea.hbm %s232_s3, 128 }
 0x156   :  { %p156_p13 = scmp.ne.s32.totalorder %s232_s3, %s155_s5  ;;  %p159_p0 = scmp.lt.u32.totalorder %s155_s5, %s232_s3 }
 0x158   :  { %p161_p1 = pnand %p159_p0, %p156_p13 }
 0x15a   :  { %164 = shalt.err (!%p161_p1)
}
 0x15b   :  { %s173_s10 = smov 64   ;;  %s174_s11 = smov 4  }
 0x15c   :  { %99 = dma.vmem_to_hbm [thread:$0]  %s94_s30, 128, %s232_s3, [#allocation4], %s173_s10, %s173_s10, %s174_s11  }
 0x15d   :  { %167 = dma.done.wait [#allocation4], 128  }
 0x15e   :  { %168 = vsyncadd [#allocation4], 4294967168 }
 0x15f   :  { %103 = vsyncpa [#allocation3], 1 }
 0x160   :  { %104 = vsyncpa [#allocation4], 1 }

</bundles_post_ra>
